<compile_context>
chip_gen: v7x
topology: tpu7x:2x2x1
jax: 0.10.0
libtpu: 0.0.40
codegen_flags: <defaults>
</compile_context>

<pallas_src>
import math

import jax
import jax.numpy as jnp
from jax.experimental import pallas as pl
from jax.experimental.pallas import tpu as pltpu


def _round_up(n, m):
    return ((n + m - 1) // m) * m


def _min_gru_kernel(x_ref, hprev_ref, w_ref, b_ref, out_ref):
    """One (tm, tn) output tile.

    x_ref:     (tm, Ip)      input rows (full padded feature width)
    hprev_ref: (tm, tn)      previous hidden-state tile
    w_ref:     (Ip, 2*tn)    fused [Wz_block | Wh_block] weights
    b_ref:     (1, 2*tn)     fused [bz_block | bh_block] biases
    out_ref:   (tm, tn)      new hidden-state tile
    """
    tn = out_ref.shape[-1]

    # One fused MXU matmul for both gates, f32 accumulation.
    lin = jnp.dot(x_ref[...], w_ref[...],
                  preferred_element_type=jnp.float32) + b_ref[...]

    # Static, lane-aligned split (tn is a multiple of 128).
    z_t = jax.nn.sigmoid(lin[:, :tn])      # EUP
    h_hat = lin[:, tn:]

    h_prev = hprev_ref[...].astype(jnp.float32)
    # (1-z)*h_prev + z*h_hat  ==  h_prev + z*(h_hat - h_prev)
    out_ref[...] = (h_prev + z_t * (h_hat - h_prev)).astype(out_ref.dtype)


def min_gru_cell(x, h_prev, wz, bz, wh, bh, *, tm=8, tn=128):
    """Pallas wrapper.

    Shapes: x [B, I], h_prev [B, H], wz/wh [I, H] (transposed vs. nn.Linear),
    bz/bh [1, H] or [H].  Returns h_t [B, H].
    """
    B, I = x.shape
    H = h_prev.shape[1]
    assert wz.shape == (I, H) and wh.shape == (I, H)

    # Pad to TPU-friendly sizes (zeros contribute nothing to the matmul; the
    # padded output rows/cols are sliced off at the end).
    Bp = _round_up(B, tm)
    Hp = _round_up(H, tn)
    Ip = _round_up(I, 128)

    f32 = jnp.float32
    xp = jnp.zeros((Bp, Ip), x.dtype).at[:B, :I].set(x)
    hp = jnp.zeros((Bp, Hp), h_prev.dtype).at[:B, :H].set(h_prev)
    wzp = jnp.zeros((Ip, Hp), f32).at[:I, :H].set(wz)
    whp = jnp.zeros((Ip, Hp), f32).at[:I, :H].set(wh)
    bzp = jnp.zeros((1, Hp), f32).at[:, :H].set(jnp.reshape(bz, (1, H)))
    bhp = jnp.zeros((1, Hp), f32).at[:, :H].set(jnp.reshape(bh, (1, H)))

    nb = Hp // tn
    # Interleave tn-wide column blocks ([z0|h0|z1|h1|...]) so output tile j
    # needs exactly one contiguous (Ip, 2*tn) weight slab at block index j.
    w_fused = jnp.stack(
        [wzp.reshape(Ip, nb, tn), whp.reshape(Ip, nb, tn)], axis=2
    ).reshape(Ip, 2 * Hp)
    b_fused = jnp.stack(
        [bzp.reshape(1, nb, tn), bhp.reshape(1, nb, tn)], axis=2
    ).reshape(1, 2 * Hp)

    grid = (Bp // tm, nb)

    out = pl.pallas_call(
        _min_gru_kernel,
        out_shape=jax.ShapeDtypeStruct((Bp, Hp), x.dtype),
        grid=grid,
        in_specs=[
            pl.BlockSpec((tm, Ip), lambda i, j: (i, 0)),       # x
            pl.BlockSpec((tm, tn), lambda i, j: (i, j)),       # h_prev
            pl.BlockSpec((Ip, 2 * tn), lambda i, j: (0, j)),   # fused weights
            pl.BlockSpec((1, 2 * tn), lambda i, j: (0, j)),    # fused biases
        ],
        out_specs=pl.BlockSpec((tm, tn), lambda i, j: (i, j)),
        compiler_params=pltpu.CompilerParams(
            dimension_semantics=("parallel", "parallel"),
        ),
    )(xp, hp, w_fused, b_fused)

    return out[:B, :H]


def _reference(x, h_prev, wz, bz, wh, bh):
    z = jax.nn.sigmoid(x @ wz + bz)
    h_hat = x @ wh + bh
    return (1.0 - z) * h_prev + z * h_hat


if __name__ == "__main__":
    input_size = 16
    hidden_size = 32
    batch = 2

    key = jax.random.PRNGKey(0)
    kx, kh, kwz, kbz, kwh, kbh = jax.random.split(key, 6)

    # Deterministic parameter init matching nn.init.uniform_(-1/sqrt(H), 1/sqrt(H)).
    scaled_mag = 1.0 / math.sqrt(hidden_size)
    wz = jax.random.uniform(kwz, (input_size, hidden_size), jnp.float32,
                            -scaled_mag, scaled_mag)
    bz = jax.random.uniform(kbz, (1, hidden_size), jnp.float32,
                            -scaled_mag, scaled_mag)
    wh = jax.random.uniform(kwh, (input_size, hidden_size), jnp.float32,
                            -scaled_mag, scaled_mag)
    bh = jax.random.uniform(kbh, (1, hidden_size), jnp.float32,
                            -scaled_mag, scaled_mag)

    x = jax.random.normal(kx, (batch, input_size), jnp.float32)
    h_prev = jax.random.normal(kh, (batch, hidden_size), jnp.float32)

    h_t = min_gru_cell(x, h_prev, wz, bz, wh, bh)
    jax.block_until_ready(h_t)

    ref = _reference(x, h_prev, wz, bz, wh, bh)
    assert h_t.shape == (batch, hidden_size)
    assert jnp.allclose(h_t, ref, atol=1e-5, rtol=1e-5), "mismatch vs reference"

    print("KERNEL_OK")
</pallas_src>

<mosaic_0001>
module attributes {stable_mosaic.version = 11 : i64} {
  func.func @_min_gru_kernel(%arg0: i32, %arg1: i32, %arg2: memref<8x128xf32, #tpu.memory_space<vmem>>, %arg3: memref<8x128xf32, #tpu.memory_space<vmem>>, %arg4: memref<128x256xf32, #tpu.memory_space<vmem>>, %arg5: memref<1x256xf32, #tpu.memory_space<vmem>>, %arg6: memref<8x128xf32, #tpu.memory_space<vmem>>) attributes {dimension_semantics = [#tpu.dimension_semantics<parallel>, #tpu.dimension_semantics<parallel>], iteration_bounds = array<i64: 1, 1>, scalar_prefetch = 0 : i64, scratch_operands = 0 : i64, tpu.core_type = #tpu.core_type<tc>, window_params = [{transform_indices = @transform_0, window_bounds = array<i64: 8, 128>}, {transform_indices = @transform_1, window_bounds = array<i64: 8, 128>}, {transform_indices = @transform_2, window_bounds = array<i64: 128, 256>}, {transform_indices = @transform_3, window_bounds = array<i64: 1, 256>}, {transform_indices = @transform_4, window_bounds = array<i64: 8, 128>}]} {
    %c0 = arith.constant 0 : index
    %c0_0 = arith.constant 0 : index
    %0 = vector.load %arg2[%c0, %c0_0] : memref<8x128xf32, #tpu.memory_space<vmem>>, vector<8x128xf32>
    %c0_1 = arith.constant 0 : index
    %c0_2 = arith.constant 0 : index
    %1 = vector.load %arg4[%c0_1, %c0_2] : memref<128x256xf32, #tpu.memory_space<vmem>>, vector<128x256xf32>
    %cst = arith.constant dense<0.000000e+00> : vector<8x256xf32>
    %2 = tpu.matmul %0, %1, %cst {dimension_numbers = #tpu.dot_dimension_numbers<[1], [0], [0], [1], [0, 0, 1, 1], [], []>} : vector<8x128xf32>, vector<128x256xf32>, vector<8x256xf32> -> vector<8x256xf32>
    %c0_3 = arith.constant 0 : index
    %c0_4 = arith.constant 0 : index
    %3 = vector.load %arg5[%c0_3, %c0_4] : memref<1x256xf32, #tpu.memory_space<vmem>>, vector<1x256xf32>
    %4 = vector.broadcast %3 : vector<1x256xf32> to vector<8x256xf32>
    %5 = arith.addf %2, %4 : vector<8x256xf32>
    %6 = vector.extract_strided_slice %5 {offsets = [0, 0], sizes = [8, 128], strides = [1, 1]} : vector<8x256xf32> to vector<8x128xf32>
    %7 = arith.negf %6 : vector<8x128xf32>
    %8 = math.exp %7 : vector<8x128xf32>
    %cst_5 = arith.constant 1.000000e+00 : f32
    %9 = vector.broadcast %cst_5 : f32 to vector<8x128xf32>
    %10 = arith.addf %9, %8 : vector<8x128xf32>
    %11 = arith.divf %9, %10 : vector<8x128xf32>
    %12 = vector.extract_strided_slice %5 {offsets = [0, 128], sizes = [8, 128], strides = [1, 1]} : vector<8x256xf32> to vector<8x128xf32>
    %c0_6 = arith.constant 0 : index
    %c0_7 = arith.constant 0 : index
    %13 = vector.load %arg3[%c0_6, %c0_7] : memref<8x128xf32, #tpu.memory_space<vmem>>, vector<8x128xf32>
    %14 = arith.subf %12, %13 : vector<8x128xf32>
    %15 = arith.mulf %11, %14 : vector<8x128xf32>
    %16 = arith.addf %13, %15 : vector<8x128xf32>
    %c0_8 = arith.constant 0 : index
    %c0_9 = arith.constant 0 : index
    %17 = vector.load %arg6[%c0_8, %c0_9] : memref<8x128xf32, #tpu.memory_space<vmem>>, vector<8x128xf32>
    tpu.vector_store %arg6[%c0_8, %c0_9], %16 {strides = array<i32>} : memref<8x128xf32, #tpu.memory_space<vmem>>, vector<8x128xf32>,
    return
  }
  func.func @transform_0(%arg0: i32, %arg1: i32) -> (i32, i32) {
    %c0_i32 = arith.constant 0 : i32
    %c0_i32_0 = arith.constant 0 : i32
    return %arg0, %c0_i32 : i32, i32
  }
  func.func @transform_1(%arg0: i32, %arg1: i32) -> (i32, i32) {
    %c0_i32 = arith.constant 0 : i32
    return %arg0, %arg1 : i32, i32
  }
  func.func @transform_2(%arg0: i32, %arg1: i32) -> (i32, i32) {
    %c0_i32 = arith.constant 0 : i32
    %c0_i32_0 = arith.constant 0 : i32
    return %c0_i32, %arg1 : i32, i32
  }
  func.func @transform_3(%arg0: i32, %arg1: i32) -> (i32, i32) {
    %c0_i32 = arith.constant 0 : i32
    %c0_i32_0 = arith.constant 0 : i32
    return %c0_i32, %arg1 : i32, i32
  }
  func.func @transform_4(%arg0: i32, %arg1: i32) -> (i32, i32) {
    %c0_i32 = arith.constant 0 : i32
    return %arg0, %arg1 : i32, i32
  }
}

</mosaic_0001>

<bundles_post_ra>
// kernel: tpu_custom_call.1
= control target key start
LH: loop header
LB: loop body
LE: loop exit
PB: predicated region body
PF: predicated region fallthrough
CT: control target
= control target key end

     0   :  { %9 = vsyncpa [#allocation3], 0  ;;  %s419_s0 = inlined_call_operand.hbm [shape: f32[8,128], index: 0, kind: input, shape index: {}]   ;;  %s420_s1 = inlined_call_operand.hbm [shape: f32[8,128], index: 1, kind: input, shape index: {}]   ;;  %s421_s2 = inlined_call_operand.hbm [shape: f32[128,256], index: 2, kind: input, shape index: {}]   ;;  %s422_s3 = inlined_call_operand.vmem [shape: f32[1,256], index: 3, kind: input, shape index: {}]   ;;  %s423_s4 = inlined_call_operand.hbm [shape: f32[8,128], index: 4, kind: output, shape index: {}]  }
   0x1   :  { %10 = vsyncpa [#allocation6], 0 }
   0x2   :  { %11 = vsyncpa [#allocation4], 0  ;;  %s336_s15 = smov [#allocation5]   ;;  %s337_s17 = smov [#allocation2]  }
   0x3   :  { %s28_s16 = sshll.u32 %s336_s15, 4  ;;  %s18_s18 = sshll.u32 %s337_s17, 4  ;;  %s29_s16 = int_to_ptr.vmem [resolvable:$true] %s28_s16  ;;  %s19_s18 = int_to_ptr.vmem [resolvable:$true] %s18_s18 }
   0x4   :  { %s242_s21 = scalar_lea.hbm %s420_s1, 128 }
   0x5   :  { %p243_p0 = scmp.ne.s32.totalorder %s420_s1, %s242_s21  ;;  %p246_p1 = scmp.lt.u32.totalorder %s242_s21, %s420_s1 }
   0x7   :  { %p248_p2 = pnand %p246_p1, %p243_p0 }
   0x9   :  { %251 = shalt.err (!%p248_p2)
}
   0xa   :  { %s252_s26 = scalar_lea.vmem %s29_s16, 128  ;;  %p257_p4 = scmp.lt.s32.totalorder %s29_s16, %s29_s16 }
   0xb   :  { %p253_p3 = scmp.ne.s32.totalorder %s29_s16, %s252_s26  ;;  %p258_p5 = scmp.lt.s32.totalorder %s252_s26, %s252_s26 }
   0xd   :  { %p259_p6 = por %p258_p5, %p257_p4 }
   0xf   :  { %p260_p7 = pnand %p259_p6, %p253_p3 }
  0x11   :  { %263 = shalt.err (!%p260_p7)
}
  0x12   :  { %31 = dma.hbm_to_vmem [thread:$0]  %s420_s1, 128, %s29_s16, [#allocation6]  }
  0x13   :  { %s264_s5 = scalar_lea.hbm %s419_s0, 128 }
  0x14   :  { %p265_p8 = scmp.ne.s32.totalorder %s419_s0, %s264_s5  ;;  %p268_p9 = scmp.lt.u32.totalorder %s264_s5, %s419_s0 }
  0x16   :  { %p270_p10 = pnand %p268_p9, %p265_p8 }
  0x18   :  { %273 = shalt.err (!%p270_p10)
}
  0x19   :  { %s274_s10 = scalar_lea.vmem %s19_s18, 128  ;;  %p279_p12 = scmp.lt.s32.totalorder %s19_s18, %s19_s18 }
  0x1a   :  { %p275_p11 = scmp.ne.s32.totalorder %s19_s18, %s274_s10  ;;  %p280_p13 = scmp.lt.s32.totalorder %s274_s10, %s274_s10 }
  0x1c   :  { %p281_p0 = por %p280_p13, %p279_p12 }
  0x1e   :  { %p282_p1 = pnand %p281_p0, %p275_p11 }
  0x20   :  { %285 = shalt.err (!%p282_p1)
}
  0x21   :  { %21 = dma.hbm_to_vmem [thread:$0]  %s419_s0, 128, %s19_s18, [#allocation3]  }
  0x22   :  { %s338_s12 = smov [#allocation7]   ;;  %s286_s16 = scalar_lea.hbm %s421_s2, 4096 }
  0x23   :  { %s37_s13 = sshll.u32 %s338_s12, 4  ;;  %p287_p2 = scmp.ne.s32.totalorder %s421_s2, %s286_s16  ;;  %s38_s13 = int_to_ptr.vmem [resolvable:$true] %s37_s13 }
  0x24   :  { %p290_p3 = scmp.lt.u32.totalorder %s286_s16, %s421_s2 }
  0x26   :  { %p292_p4 = pnand %p290_p3, %p287_p2 }
  0x28   :  { %295 = shalt.err (!%p292_p4)
}
  0x29   :  { %s296_s22 = scalar_lea.vmem %s38_s13, 4096  ;;  %p301_p6 = scmp.lt.s32.totalorder %s38_s13, %s38_s13 }
  0x2a   :  { %p297_p5 = scmp.ne.s32.totalorder %s38_s13, %s296_s22  ;;  %p302_p7 = scmp.lt.s32.totalorder %s296_s22, %s296_s22 }
  0x2c   :  { %p303_p8 = por %p302_p7, %p301_p6 }
  0x2e   :  { %p304_p9 = pnand %p303_p8, %p297_p5 }
  0x30   :  { %307 = shalt.err (!%p304_p9)
}
  0x31   :  { %s339_s0 = smov 256   ;;  %s340_s18 = smov 16  }
  0x32   :  { %43 = dma.hbm_to_vmem [thread:$0]  %s421_s2, 4096, %s38_s13, [#allocation6], %s339_s0, %s339_s0, %s340_s18  }
  0x33   :  { %330 = dma.done.wait [#allocation3], 128  }
  0x34   :  { %331 = vsyncadd [#allocation3], 4294967168 }
  0x35   :  { %332 = dma.done.wait [#allocation6], 4224  }
  0x36   :  { %333 = vsyncadd [#allocation6], 4294963072  ;;  %v341_v0 = vmov 0.0   ;;  %v57_v1 = vld [vmem:[#allocation7 + $0x8] sm:$0xff]  ;;  %v59_v2 = vld [vmem:[#allocation7 + $0x18] sm:$0xff]  ;;  %v90_v50 = vlaneseq  ;;  %s342_s26 = smov [#allocation8]  }
  0x37   :  { %164 = vmatprep.mubr.f32.mxu0 %v341_v0  ;;  %v56_v3 = vld [vmem:[#allocation7] sm:$0xff]  ;;  %v199_v4 = vpack.c.bf16 %v59_v2, %v57_v1  ;;  %v58_v5 = vld [vmem:[#allocation7 + $0x10] sm:$0xff]  ;;  %v61_v6 = vld [vmem:[#allocation7 + $0x28] sm:$0xff]  ;;  %s188_s27 = sshll.u32 %s342_s26, 4  ;;  %s189_s27 = int_to_ptr.vmem [resolvable:$true] %s188_s27 }
  0x38   :  { %v63_v7 = vld [vmem:[#allocation7 + $0x38] sm:$0xff]  ;;  %v201_v8 = vpack.c.bf16 %v58_v5, %v56_v3  ;;  %v60_v10 = vld [vmem:[#allocation7 + $0x20] sm:$0xff]  ;;  %v62_v11 = vld [vmem:[#allocation7 + $0x30] sm:$0xff]  ;;  %v91_v51 = vshrl.u32 %v90_v50, 7  ;;  %p313_p11 = scmp.lt.s32.totalorder %s189_s27, %s189_s27 }
  0x39   :  { %v203_v9 = vpack.c.bf16 %v63_v7, %v61_v6  ;;  %v65_v12 = vld [vmem:[#allocation7 + $0x48] sm:$0xff]  ;;  %200 = vmatprep.subr.bf16.mxu0 %v199_v4  ;;  %v67_v13 = vld [vmem:[#allocation7 + $0x58] sm:$0xff]  ;;  %v205_v14 = vpack.c.bf16 %v62_v11, %v60_v10  ;;  %v64_v16 = vld [vmem:[#allocation7 + $0x40] sm:$0xff] }
  0x3a   :  { %202 = vmatpush1.bf16.msra.mxu0 %v201_v8  ;;  %v207_v15 = vpack.c.bf16 %v67_v13, %v65_v12  ;;  %v66_v17 = vld [vmem:[#allocation7 + $0x50] sm:$0xff]  ;;  %v69_v18 = vld [vmem:[#allocation7 + $0x68] sm:$0xff]  ;;  %v71_v19 = vld [vmem:[#allocation7 + $0x78] sm:$0xff]  ;;  %v92_v52 = vsub.s32 0, %v91_v51  ;;  %v96_v60 = vsub.s32 1, %v91_v51 }
  0x3b   :  { %204 = vmatprep.subr.bf16.mxu0 %v203_v9  ;;  %v209_v20 = vpack.c.bf16 %v66_v17, %v64_v16  ;;  %v211_v21 = vpack.c.bf16 %v71_v19, %v69_v18  ;;  %v68_v22 = vld [vmem:[#allocation7 + $0x60] sm:$0xff]  ;;  %v70_v23 = vld [vmem:[#allocation7 + $0x70] sm:$0xff]  ;;  %v73_v24 = vld [vmem:[#allocation7 + $0x88] sm:$0xff] }
  0x3c   :  { %v75_v25 = vld [vmem:[#allocation7 + $0x98] sm:$0xff]  ;;  %v213_v26 = vpack.c.bf16 %v70_v23, %v68_v22  ;;  %v72_v28 = vld [vmem:[#allocation7 + $0x80] sm:$0xff]  ;;  %v74_v29 = vld [vmem:[#allocation7 + $0x90] sm:$0xff] }
  0x3d   :  { %v215_v27 = vpack.c.bf16 %v75_v25, %v73_v24  ;;  %v77_v30 = vld [vmem:[#allocation7 + $0xa8] sm:$0xff]  ;;  %v79_v31 = vld [vmem:[#allocation7 + $0xb8] sm:$0xff]  ;;  %v217_v32 = vpack.c.bf16 %v74_v29, %v72_v28  ;;  %v76_v34 = vld [vmem:[#allocation7 + $0xa0] sm:$0xff] }
  0x3e   :  { %206 = vmatpush1.bf16.msra.mxu0 %v205_v14  ;;  %v219_v33 = vpack.c.bf16 %v79_v31, %v77_v30  ;;  %v78_v35 = vld [vmem:[#allocation7 + $0xb0] sm:$0xff]  ;;  %v81_v36 = vld [vmem:[#allocation7 + $0xc8] sm:$0xff]  ;;  %v83_v37 = vld [vmem:[#allocation7 + $0xd8] sm:$0xff] }
  0x3f   :  { %208 = vmatprep.subr.bf16.mxu0 %v207_v15  ;;  %v221_v38 = vpack.c.bf16 %v78_v35, %v76_v34  ;;  %v223_v39 = vpack.c.bf16 %v83_v37, %v81_v36  ;;  %v80_v40 = vld [vmem:[#allocation7 + $0xc0] sm:$0xff]  ;;  %v82_v41 = vld [vmem:[#allocation7 + $0xd0] sm:$0xff]  ;;  %v85_v42 = vld [vmem:[#allocation7 + $0xe8] sm:$0xff] }
  0x40   :  { %v87_v43 = vld [vmem:[#allocation7 + $0xf8] sm:$0xff]  ;;  %v225_v44 = vpack.c.bf16 %v82_v41, %v80_v40  ;;  %v84_v46 = vld [vmem:[#allocation7 + $0xe0] sm:$0xff]  ;;  %v86_v47 = vld [vmem:[#allocation7 + $0xf0] sm:$0xff] }
  0x41   :  { %v227_v45 = vpack.c.bf16 %v87_v43, %v85_v42  ;;  %v229_v48 = vpack.c.bf16 %v86_v47, %v84_v46  ;;  %v55_v49 = vld [vmem:[#allocation2] sm:$0xff]  ;;  %v177_v0 = vld [vmem:[#allocation5] sm:$0xff] }
  0x42   :  { %210 = vmatpush1.bf16.msra.mxu0 %v209_v20  ;;  %v88_v53 = vld [vmem:[%s422_s3] sm:$0x3]  ;;  %s308_s3 = scalar_lea.vmem %s189_s27, 128 }
  0x43   :  { %212 = vmatprep.subr.bf16.mxu0 %v211_v21  ;;  %v93_v54 = vrot.slane %v88_v53, %v92_v52  ;;  %v97_v62 = vrot.slane %v88_v53, %v96_v60  ;;  %p309_p10 = scmp.ne.s32.totalorder %s189_s27, %s308_s3  ;;  %p314_p12 = scmp.lt.s32.totalorder %s308_s3, %s308_s3 }
  0x45   :  { %p315_p13 = por %p314_p12, %p313_p11 }
  0x46   :  { %214 = vmatpush1.bf16.msra.mxu0 %v213_v26 }
  0x47   :  { %216 = vmatprep.subr.bf16.mxu0 %v215_v27  ;;  %p316_p0 = pnand %p315_p13, %p309_p10 }
  0x4a   :  { %218 = vmatpush1.bf16.msra.mxu0 %v217_v32 }
  0x4b   :  { %220 = vmatprep.subr.bf16.mxu0 %v219_v33 }
  0x4e   :  { %222 = vmatpush1.bf16.msra.mxu0 %v221_v38 }
  0x4f   :  { %224 = vmatprep.subr.bf16.mxu0 %v223_v39 }
  0x52   :  { %226 = vmatpush1.bf16.msra.mxu0 %v225_v44 }
  0x53   :  { %228 = vmatprep.subr.bf16.mxu0 %v227_v45 }
  0x56   :  { %230 = vmatpush1.bf16.msra.mxu0 %v229_v48 }
  0x59   :  { %165 = vmatmul.mubr.f32.vlgmr.msra.gmra.mrb[0].mxu0 %v55_v49 }
 0x12c   :  { %v166_v55 = vpop.f32.mrb[0].mxu0 }
 0x12d   :  { %v167_v56 = vadd.f32 %v166_v55, %v93_v54  ;;  %v168_v57 = vpop.f32.mrb[1].mxu0 }
 0x12e   :  { %v169_v63 = vadd.f32 %v168_v57, %v97_v62 }
 0x12f   :  { %v198_v58 = vmul.f32 -1.442695, %v167_v56 }
 0x130   :  { %v178_v1 = vsub.f32 %v169_v63, %v177_v0 }
 0x131   :  { %238 = vpow2.f32 %v198_v58 }
 0x13b   :  { %v239_v59 = vpop.eup %238 }
 0x13c   :  { %v174_v61 = vadd.f32 1.0, %v239_v59 }
 0x13e   :  { %240 = vrcp.f32 %v174_v61 }
 0x148   :  { %v241_v2 = vpop.eup %240 }
 0x149   :  { %v179_v3 = vmul.f32 %v241_v2, %v178_v1 }
 0x14b   :  { %v180_v4 = vadd.f32 %v179_v3, %v177_v0 }
 0x14d   :  { %181 = vst [vmem:[#allocation8] sm:$0xff] %v180_v4 }
 0x14e   :  { %319 = shalt.err (!%p316_p0)
}
 0x14f   :  { %s320_s30 = scalar_lea.hbm %s423_s4, 128 }
 0x150   :  { %p321_p1 = scmp.ne.s32.totalorder %s423_s4, %s320_s30  ;;  %p324_p2 = scmp.lt.u32.totalorder %s320_s30, %s423_s4 }
 0x152   :  { %p326_p3 = pnand %p324_p2, %p321_p1 }
 0x154   :  { %329 = shalt.err (!%p326_p3)
}
 0x155   :  { %191 = dma.vmem_to_hbm [thread:$0]  %s189_s27, 128, %s423_s4, [#allocation4]  }
 0x156   :  { %334 = dma.done.wait [#allocation4], 128  }
 0x157   :  { %335 = vsyncadd [#allocation4], 4294967168 }
 0x158   :  { %195 = vsyncpa [#allocation3], 1 }
 0x159   :  { %196 = vsyncpa [#allocation6], 1 }
 0x15a   :  { %197 = vsyncpa [#allocation4], 1 }

</bundles_post_ra>
